<compile_context>
chip_gen: v5e
topology: v5e:2x2
jax: 0.10.0
libtpu: 0.0.40
codegen_flags: <defaults>
</compile_context>

<pallas_src>
import functools

import jax
import jax.numpy as jnp
from jax import lax
from jax.experimental import pallas as pl
from jax.experimental.pallas import tpu as pltpu

# ----- default quantization config (matches Linear_mvm defaults) -------------
WEIGHT_BITS = 16
INPUT_BITS = 16
ACM_BITS = 16
WEIGHT_BIT_FRAC = WEIGHT_BITS // 4 * 3   # 12 (weight_bit_frac == -1 branch)
INPUT_BIT_FRAC = INPUT_BITS // 4 * 3     # 12 (input_bit_frac == -1 branch)
ACM_BIT_FRAC = ACM_BITS // 4 * 3         # 12 (acm_bit_frac == -1 branch)

# The in-kernel scale fold (accumulate raw int-weight products, rescale at
# finalize) is bit-exact only because both scales are the same power of two.
assert ACM_BIT_FRAC == WEIGHT_BIT_FRAC, "scale fold requires matching fracs"

ACM_INV_SCALE = 2.0 ** (-ACM_BIT_FRAC)
ACM_QMIN_RAW = -(2.0 ** (ACM_BITS - 1))       # clip bounds on the RAW accumulator
ACM_QMAX_RAW = 2.0 ** (ACM_BITS - 1) - 1


def _fxp_quant(x, bits, frac):
    """Signed fixed-point quantization: `bits` total bits, `frac` fractional bits."""
    scale = jnp.float32(2.0 ** frac)
    qmin = jnp.float32(-(2.0 ** (bits - 1)))
    qmax = jnp.float32(2.0 ** (bits - 1) - 1)
    return jnp.clip(jnp.round(x * scale), qmin, qmax) / scale


def _round_up(v, m):
    return (v + m - 1) // m * m


def quantize_weight_int16_t(weight):
    """Weight -> int16 fixed point (value * 2^12), transposed to [Fin, Fout].

    int16 * 2^-12 is bit-exact with _fxp_quant(weight, 16, 12); halves HBM bytes.
    """
    scale = jnp.float32(2.0 ** WEIGHT_BIT_FRAC)
    qmin = jnp.float32(-(2.0 ** (WEIGHT_BITS - 1)))
    qmax = jnp.float32(2.0 ** (WEIGHT_BITS - 1) - 1)
    q = jnp.clip(jnp.round(weight.astype(jnp.float32) * scale), qmin, qmax)
    return q.astype(jnp.int16).T  # [Fin, Fout]


# ---------------------------------------------------------------------------
# Kernel
# ---------------------------------------------------------------------------
def linear_mvm_kernel(x_ref, w_ref, b_ref, o_ref, acc_ref, *, k_chunk):
    # Grid: (b = batch tile, j = Fout tile, k = Fin/K tile).  K is last (reduction).
    k = pl.program_id(2)

    @pl.when(k == 0)
    def _():
        acc_ref[...] = jnp.zeros_like(acc_ref)

    # Chunked int16 -> f32 upcast: never materialize the full (tk, tn) f32
    # weight tile; convert <=k_chunk K-rows at a time and feed the MXU.
    n_chunks = w_ref.shape[0] // k_chunk

    def body(c, carry):
        off = pl.multiple_of(c * k_chunk, k_chunk)
        w_slab = w_ref[pl.ds(off, k_chunk), :].astype(jnp.float32)  # raw int values
        acc_ref[...] += jnp.dot(
            x_ref[:, pl.ds(off, k_chunk)], w_slab,
            preferred_element_type=jnp.float32)
        return carry

    lax.fori_loop(0, n_chunks, body, 0, unroll=True)

    @pl.when(k == pl.num_programs(2) - 1)
    def _():
        # acc holds raw = xq @ W_int = true_acc * 2^12.  ACM fixed-point quant
        # folded: clip(round(raw), -2^15, 2^15-1) * 2^-12, bit-exact with
        # _fxp_quant(raw * 2^-12, 16, 12) because all scales are powers of two.
        raw = acc_ref[...]
        q = jnp.clip(jnp.round(raw),
                     jnp.float32(ACM_QMIN_RAW), jnp.float32(ACM_QMAX_RAW))
        o_ref[...] = q * jnp.float32(ACM_INV_SCALE) + b_ref[...]


# ---------------------------------------------------------------------------
# One-time weight preparation (cache the result; do NOT call per forward)
# ---------------------------------------------------------------------------
def prepare_linear_mvm(weight, bias=None, *, tb=128, tn=1024, tk=2048):
    """Quantize + transpose + pad the weight/bias once.  Returns params dict."""
    Fout, Fin = weight.shape

    # normalize tiles to lane/sublane-friendly multiples
    tn = max(128, (tn // 128) * 128)
    tk = max(128, (tk // 128) * 128)
    tb = max(8, (tb // 8) * 8)

    Fin_p = _round_up(Fin, 128)
    tk = min(tk, Fin_p)
    Fin_p = _round_up(Fin_p, tk)

    Fout_p = _round_up(Fout, 128)
    tn = min(tn, Fout_p)
    Fout_p = _round_up(Fout_p, tn)

    w_t_i16 = quantize_weight_int16_t(weight)                         # [Fin, Fout]
    w_p = jnp.zeros((Fin_p, Fout_p), jnp.int16).at[:Fin, :Fout].set(w_t_i16)

    if bias is None:
        bias = jnp.zeros((Fout,), jnp.float32)
    b_p = jnp.zeros((1, Fout_p), jnp.float32).at[0, :Fout].set(bias.astype(jnp.float32))

    return dict(w_p=w_p, b_p=b_p, Fin=Fin, Fout=Fout,
                Fin_p=Fin_p, Fout_p=Fout_p, tb=tb, tn=tn, tk=tk)


# ---------------------------------------------------------------------------
# Forward (hot path): only streams the cached int16 weight
# ---------------------------------------------------------------------------
def linear_mvm_apply(x, params, *, weight_buffers=2):
    w_p, b_p = params["w_p"], params["b_p"]
    Fin, Fout = params["Fin"], params["Fout"]
    Fin_p, Fout_p = params["Fin_p"], params["Fout_p"]
    tb, tn, tk = params["tb"], params["tn"], params["tk"]

    B, Fin_x = x.shape
    assert Fin_x == Fin

    # Input quantization: tiny [B, Fin], done once in the wrapper.
    xq = _fxp_quant(x.astype(jnp.float32), INPUT_BITS, INPUT_BIT_FRAC)

    B_p = _round_up(B, 8)
    tb = min(tb, B_p)
    B_p = _round_up(B_p, tb)
    xq_p = jnp.zeros((B_p, Fin_p), jnp.float32).at[:B, :Fin].set(xq)

    # chunk size for the in-kernel int16->f32 upcast (must divide tk; tk % 128 == 0)
    if tk % 512 == 0:
        k_chunk = 512
    elif tk % 256 == 0:
        k_chunk = 256
    else:
        k_chunk = 128

    grid = (B_p // tb, Fout_p // tn, Fin_p // tk)

    if weight_buffers > 2:
        # Deepen only the dominant (weight) DMA if a trace shows exposed DMA.
        w_spec = pl.BlockSpec((tk, tn), lambda b, j, k: (k, j),
                              pipeline_mode=pl.Buffered(weight_buffers))
    else:
        w_spec = pl.BlockSpec((tk, tn), lambda b, j, k: (k, j))

    out_p = pl.pallas_call(
        functools.partial(linear_mvm_kernel, k_chunk=k_chunk),
        out_shape=jax.ShapeDtypeStruct((B_p, Fout_p), jnp.float32),
        grid_spec=pltpu.PrefetchScalarGridSpec(
            num_scalar_prefetch=0,
            grid=grid,
            in_specs=[
                pl.BlockSpec((tb, tk), lambda b, j, k: (b, k)),   # quantized x
                w_spec,                                           # int16 W^T tile
                pl.BlockSpec((1, tn), lambda b, j, k: (0, j)),    # bias tile
            ],
            out_specs=pl.BlockSpec((tb, tn), lambda b, j, k: (b, j)),
            scratch_shapes=[pltpu.VMEM((tb, tn), jnp.float32)],
        ),
        compiler_params=pltpu.CompilerParams(
            # batch & Fout tiles independent -> parallel (shards across v7x's
            # 2 TCs); K is the reduction -> arbitrary.
            dimension_semantics=("parallel", "parallel", "arbitrary"),
        ),
    )(xq_p, w_p, b_p)

    return out_p[:B, :Fout]


def linear_mvm(x, weight, bias, *, tb=128, tn=1024, tk=2048):
    """Convenience one-shot path.  For repeated calls, cache prepare_linear_mvm()."""
    params = prepare_linear_mvm(weight, bias, tb=tb, tn=tn, tk=tk)
    return linear_mvm_apply(x, params)


def linear_mvm_reference(x, weight, bias):
    """Pure-JAX reference with identical quantization semantics."""
    xq = _fxp_quant(x.astype(jnp.float32), INPUT_BITS, INPUT_BIT_FRAC)
    wq = _fxp_quant(weight.astype(jnp.float32), WEIGHT_BITS, WEIGHT_BIT_FRAC)
    acc = _fxp_quant(xq @ wq.T, ACM_BITS, ACM_BIT_FRAC)
    return acc + bias[None, :]


if __name__ == "__main__":
    # Small shapes consistent with the module: batch=2, in_features=32, out_features=16.
    B, Fin, Fout = 2, 32, 16

    key = jax.random.PRNGKey(0)
    k_x, k_w, k_b = jax.random.split(key, 3)

    # Deterministic parameter init (synthetic; the torch module leaves weight
    # uninitialized and draws bias ~ U(-0.1, 0.1)).
    weight = jax.random.uniform(k_w, (Fout, Fin), jnp.float32, -0.5, 0.5)
    bias = jax.random.uniform(k_b, (Fout,), jnp.float32, -0.1, 0.1)
    x = jax.random.normal(k_x, (B, Fin), jnp.float32)

    # One-time weight prep (cache this across forward calls).
    params = prepare_linear_mvm(weight, bias)

    out = linear_mvm_apply(x, params)
    out = jax.block_until_ready(out)

    ref = linear_mvm_reference(x, weight, bias)
    assert out.shape == (B, Fout)
    # Tolerance = one ACM LSB (2^-12): the tiled MXU accumulation order can
    # differ from XLA's dot and flip a round() tie by one quantization step.
    assert jnp.allclose(out, ref, atol=2.0 ** (-ACM_BIT_FRAC) + 1e-6), \
        "Pallas kernel mismatch vs reference"

    print("KERNEL_OK")
</pallas_src>

<mosaic_0001>
module attributes {stable_mosaic.version = 11 : i64} {
  func.func @linear_mvm_kernel(%arg0: i32, %arg1: i32, %arg2: i32, %arg3: memref<8x128xf32, #tpu.memory_space<vmem>>, %arg4: memref<128x128xi16, #tpu.memory_space<vmem>>, %arg5: memref<1x128xf32, #tpu.memory_space<vmem>>, %arg6: memref<8x128xf32, #tpu.memory_space<vmem>>, %arg7: memref<8x128xf32, #tpu.memory_space<vmem>>) attributes {dimension_semantics = [#tpu.dimension_semantics<parallel>, #tpu.dimension_semantics<parallel>, #tpu.dimension_semantics<arbitrary>], iteration_bounds = array<i64: 1, 1, 1>, scalar_prefetch = 0 : i64, scratch_operands = 1 : i64, tpu.core_type = #tpu.core_type<tc>, window_params = [{transform_indices = @transform_0, window_bounds = array<i64: 8, 128>}, {transform_indices = @transform_1, window_bounds = array<i64: 128, 128>}, {transform_indices = @transform_2, window_bounds = array<i64: 1, 128>}, {transform_indices = @transform_3, window_bounds = array<i64: 8, 128>}]} {
    %c0_i32 = arith.constant 0 : i32
    %0 = arith.cmpi eq, %arg2, %c0_i32 : i32
    %1 = arith.extui %0 : i1 to i32
    %c0_i32_0 = arith.constant 0 : i32
    %2 = arith.cmpi ne, %1, %c0_i32_0 : i32
    scf.if %2 {
      %cst_9 = arith.constant 0.000000e+00 : f32
      %17 = vector.broadcast %cst_9 : f32 to vector<8x128xf32>
      %c0_10 = arith.constant 0 : index
      %c0_11 = arith.constant 0 : index
      %18 = vector.load %arg7[%c0_10, %c0_11] : memref<8x128xf32, #tpu.memory_space<vmem>>, vector<8x128xf32>
      tpu.vector_store %arg7[%c0_10, %c0_11], %17 {strides = array<i32>} : memref<8x128xf32, #tpu.memory_space<vmem>>, vector<8x128xf32>,
    } else {
    }
    %c0_i32_1 = arith.constant 0 : i32
    %c128_i32 = arith.constant 128 : i32
    %3 = arith.muli %c0_i32_1, %c128_i32 : i32
    %4 = tpu.assume_multiple %3, 128 : i32
    %5 = arith.index_cast %4 : i32 to index
    %c0 = arith.constant 0 : index
    %6 = vector.load %arg4[%5, %c0] : memref<128x128xi16, #tpu.memory_space<vmem>>, vector<128x128xi16>
    %7 = arith.sitofp %6 : vector<128x128xi16> to vector<128x128xf32>
    %c0_2 = arith.constant 0 : index
    %c0_3 = arith.constant 0 : index
    %8 = vector.load %arg7[%c0_2, %c0_3] : memref<8x128xf32, #tpu.memory_space<vmem>>, vector<8x128xf32>
    %c0_4 = arith.constant 0 : index
    %9 = arith.index_cast %4 : i32 to index
    %10 = vector.load %arg3[%c0_4, %9] : memref<8x128xf32, #tpu.memory_space<vmem>>, vector<8x128xf32>
    %cst = arith.constant dense<0.000000e+00> : vector<8x128xf32>
    %11 = tpu.matmul %10, %7, %cst {dimension_numbers = #tpu.dot_dimension_numbers<[1], [0], [0], [1], [0, 0, 1, 1], [], []>} : vector<8x128xf32>, vector<128x128xf32>, vector<8x128xf32> -> vector<8x128xf32>
    %12 = arith.addf %8, %11 : vector<8x128xf32>
    %c0_5 = arith.constant 0 : index
    %c0_6 = arith.constant 0 : index
    %13 = vector.load %arg7[%c0_5, %c0_6] : memref<8x128xf32, #tpu.memory_space<vmem>>, vector<8x128xf32>
    tpu.vector_store %arg7[%c0_5, %c0_6], %12 {strides = array<i32>} : memref<8x128xf32, #tpu.memory_space<vmem>>, vector<8x128xf32>,
    %c1_i32 = arith.constant 1 : i32
    %c0_i32_7 = arith.constant 0 : i32
    %14 = arith.cmpi eq, %arg2, %c0_i32_7 : i32
    %15 = arith.extui %14 : i1 to i32
    %c0_i32_8 = arith.constant 0 : i32
    %16 = arith.cmpi ne, %15, %c0_i32_8 : i32
    scf.if %16 {
      %c0_9 = arith.constant 0 : index
      %c0_10 = arith.constant 0 : index
      %17 = vector.load %arg7[%c0_9, %c0_10] : memref<8x128xf32, #tpu.memory_space<vmem>>, vector<8x128xf32>
      %18 = math.roundeven %17 : vector<8x128xf32>
      %cst_11 = arith.constant -3.276800e+04 : f32
      %cst_12 = arith.constant 3.276700e+04 : f32
      %19 = vector.broadcast %cst_11 : f32 to vector<8x128xf32>
      %20 = arith.maximumf %19, %18 : vector<8x128xf32>
      %21 = vector.broadcast %cst_12 : f32 to vector<8x128xf32>
      %22 = arith.minimumf %21, %20 : vector<8x128xf32>
      %cst_13 = arith.constant 2.44140625E-4 : f32
      %23 = vector.broadcast %cst_13 : f32 to vector<8x128xf32>
      %24 = arith.mulf %22, %23 : vector<8x128xf32>
      %c0_14 = arith.constant 0 : index
      %c0_15 = arith.constant 0 : index
      %25 = vector.load %arg5[%c0_14, %c0_15] : memref<1x128xf32, #tpu.memory_space<vmem>>, vector<1x128xf32>
      %26 = vector.broadcast %25 : vector<1x128xf32> to vector<8x128xf32>
      %27 = arith.addf %24, %26 : vector<8x128xf32>
      %c0_16 = arith.constant 0 : index
      %c0_17 = arith.constant 0 : index
      %28 = vector.load %arg6[%c0_16, %c0_17] : memref<8x128xf32, #tpu.memory_space<vmem>>, vector<8x128xf32>
      tpu.vector_store %arg6[%c0_16, %c0_17], %27 {strides = array<i32>} : memref<8x128xf32, #tpu.memory_space<vmem>>, vector<8x128xf32>,
    } else {
    }
    return
  }
  func.func @transform_0(%arg0: i32, %arg1: i32, %arg2: i32) -> (i32, i32) {
    %c0_i32 = arith.constant 0 : i32
    return %arg0, %arg2 : i32, i32
  }
  func.func @transform_1(%arg0: i32, %arg1: i32, %arg2: i32) -> (i32, i32) {
    %c0_i32 = arith.constant 0 : i32
    return %arg2, %arg1 : i32, i32
  }
  func.func @transform_2(%arg0: i32, %arg1: i32, %arg2: i32) -> (i32, i32) {
    %c0_i32 = arith.constant 0 : i32
    %c0_i32_0 = arith.constant 0 : i32
    return %c0_i32, %arg1 : i32, i32
  }
  func.func @transform_3(%arg0: i32, %arg1: i32, %arg2: i32) -> (i32, i32) {
    %c0_i32 = arith.constant 0 : i32
    return %arg0, %arg1 : i32, i32
  }
}

</mosaic_0001>

<bundles_post_ra>
// kernel: tpu_custom_call.1
= control target key start
LH: loop header
LB: loop body
LE: loop exit
PB: predicated region body
PF: predicated region fallthrough
CT: control target
= control target key end

     0   :  { %8 = vsyncpa [#allocation4], 0  ;;  %s322_s0 = inlined_call_operand.hbm [shape: f32[8,128], index: 0, kind: input, shape index: {}]   ;;  %s323_s1 = inlined_call_operand.hbm [shape: s16[128,128], index: 1, kind: input, shape index: {}]   ;;  %s324_s2 = inlined_call_operand.vmem [shape: f32[1,128], index: 2, kind: input, shape index: {}]   ;;  %s325_s3 = inlined_call_operand.hbm [shape: f32[8,128], index: 3, kind: output, shape index: {}]  }
   0x1   :  { %9 = vsyncpa [#allocation7], 0 }
   0x2   :  { %10 = vsyncpa [#allocation5], 0  ;;  %s16_s14 = sshll.u32 %s322_s0, 4  ;;  %s285_s15 = smov [#allocation3]   ;;  %s17_s14 = int_to_ptr.hbm [resolvable:$true] %s16_s14 }
   0x3   :  { %s18_s16 = sshll.u32 %s285_s15, 4  ;;  %s26_s19 = sshll.u32 %s323_s1, 4  ;;  %s19_s16 = int_to_ptr.vmem [resolvable:$true] %s18_s16  ;;  %s27_s19 = int_to_ptr.hbm [resolvable:$true] %s26_s19 }
   0x4   :  { %21 = dma.hbm_to_vmem [thread:$0]  %s17_s14, 128, %s19_s16, [#allocation4]  }
   0x5   :  { %s286_s20 = smov [#allocation6]   ;;  %s287_s22 = smov 64  }
   0x6   :  { %s28_s21 = sshll.u32 %s286_s20, 4  ;;  %s288_s23 = smov 4   ;;  %s29_s21 = int_to_ptr.vmem [resolvable:$true] %s28_s21 }
   0x7   :  { %34 = dma.hbm_to_vmem [thread:$0]  %s27_s19, 1024, %s29_s21, [#allocation7], %s287_s22, %s287_s22, %s288_s23  }
   0x8   :  { %279 = dma.done.wait [#allocation4], 128  }
   0x9   :  { %280 = vsyncadd [#allocation4], 4294967168 }
   0xa   :  { %281 = dma.done.wait [#allocation7], 1024  }
   0xb   :  { %282 = vsyncadd [#allocation7], 4294966272  ;;  %v192_v0 = vld [vmem:[#allocation6 + $0x38] sm:$0xff]   ;;  %v191_v1 = vld [vmem:[#allocation6 + $0x30] sm:$0xff]   ;;  %s289_s24 = smov [#allocation8]   ;;  %s143_s28 = sshll.u32 %s325_s3, 4  ;;  %s144_s28 = int_to_ptr.hbm [resolvable:$true] %s143_s28 }
   0xc   :  { %v185_v2 = vunpack.c.h.b16 %v192_v0  ;;  %v184_v3 = vunpack.c.l.b16 %v192_v0  ;;  %v181_v4 = vunpack.c.h.b16 %v191_v1  ;;  %v190_v5 = vld [vmem:[#allocation6 + $0x28] sm:$0xff]   ;;  %v180_v8 = vunpack.c.l.b16 %v191_v1  ;;  %v189_v11 = vld [vmem:[#allocation6 + $0x20] sm:$0xff]   ;;  %v188_v16 = vld [vmem:[#allocation6 + $0x18] sm:$0xff]   ;;  %s141_s25 = sshll.u32 %s289_s24, 4  ;;  %s142_s25 = int_to_ptr.vmem [resolvable:$true] %s141_s25 }
   0xd   :  { %v177_v10 = vunpack.c.h.b16 %v190_v5  ;;  %v176_v13 = vunpack.c.l.b16 %v190_v5  ;;  %v173_v15 = vunpack.c.h.b16 %v189_v11  ;;  %v172_v18 = vunpack.c.l.b16 %v189_v11  ;;  %v187_v21 = vld [vmem:[#allocation6 + $0x10] sm:$0xff]   ;;  %v186_v26 = vld [vmem:[#allocation6 + $0x8] sm:$0xff]   ;;  %v155_v31 = vld [vmem:[#allocation6] sm:$0xff]  }
   0xe   :  { %v97_v6 = vcvt.s32.f32 %v185_v2  ;;  %v96_v7 = vcvt.s32.f32 %v184_v3  ;;  %v95_v9 = vcvt.s32.f32 %v181_v4  ;;  %v94_v12 = vcvt.s32.f32 %v180_v8  ;;  %v99_v40 = vld [vmem:[#allocation3] sm:$0xff] }
   0xf   :  { %v93_v14 = vcvt.s32.f32 %v177_v10  ;;  %v92_v17 = vcvt.s32.f32 %v176_v13  ;;  %v91_v19 = vcvt.s32.f32 %v173_v15  ;;  %v169_v20 = vunpack.c.h.b16 %v188_v16  ;;  %v206_v51 = vld [vmem:[%s324_s2] ss:$0 sm:$0xff] }
  0x10   :  { %100 = vmatpush.msra.mxu0 %v97_v6  ;;  %v90_v22 = vcvt.s32.f32 %v172_v18  ;;  %v168_v23 = vunpack.c.l.b16 %v188_v16  ;;  %v165_v25 = vunpack.c.h.b16 %v187_v21  ;;  %v164_v28 = vunpack.c.l.b16 %v187_v21 }
  0x11   :  { %v89_v24 = vcvt.s32.f32 %v169_v20  ;;  %v161_v30 = vunpack.c.h.b16 %v186_v26  ;;  %v160_v33 = vunpack.c.l.b16 %v186_v26  ;;  %v157_v35 = vunpack.c.h.b16 %v155_v31 }
  0x12   :  { %101 = vmatpush.msra.mxu0 %v96_v7  ;;  %v88_v27 = vcvt.s32.f32 %v168_v23  ;;  %v87_v29 = vcvt.s32.f32 %v165_v25  ;;  %v86_v32 = vcvt.s32.f32 %v164_v28  ;;  %v156_v37 = vunpack.c.l.b16 %v155_v31 }
  0x13   :  { %v85_v34 = vcvt.s32.f32 %v161_v30  ;;  %v84_v36 = vcvt.s32.f32 %v160_v33  ;;  %v83_v38 = vcvt.s32.f32 %v157_v35 }
  0x14   :  { %102 = vmatpush.msra.mxu0 %v95_v9  ;;  %v82_v39 = vcvt.s32.f32 %v156_v37 }
  0x16   :  { %103 = vmatpush.msra.mxu0 %v94_v12 }
  0x18   :  { %104 = vmatpush.msra.mxu0 %v93_v14 }
  0x1a   :  { %105 = vmatpush.msra.mxu0 %v92_v17 }
  0x1c   :  { %106 = vmatpush.msra.mxu0 %v91_v19 }
  0x1e   :  { %107 = vmatpush.msra.mxu0 %v90_v22 }
  0x20   :  { %108 = vmatpush.msra.mxu0 %v89_v24 }
  0x22   :  { %109 = vmatpush.msra.mxu0 %v88_v27 }
  0x24   :  { %110 = vmatpush.msra.mxu0 %v87_v29 }
  0x26   :  { %111 = vmatpush.msra.mxu0 %v86_v32 }
  0x28   :  { %112 = vmatpush.msra.mxu0 %v85_v34 }
  0x2a   :  { %113 = vmatpush.msra.mxu0 %v84_v36 }
  0x2c   :  { %114 = vmatpush.msra.mxu0 %v83_v38 }
  0x2e   :  { %115 = vmatpush.msra.mxu0 %v82_v39 }
  0x2f   :  { %116 = vmatmul.f32.vlgmr.msra.gmra.mxu0 %v99_v40 }
  0xac   :  { %v117_v41 = vpop.f32.mrf.mxu0 }
  0xad   :  { %v195_v42 = vcvt.f32.s32 %v117_v41  ;;  %v193_v44 = vand.u32 2147483647, %v117_v41  ;;  %v198_v46 = vand.u32 2147483648, %v117_v41 }
  0xaf   :  { %v196_v43 = vcvt.s32.f32 %v195_v42  ;;  %vm194_vm0 = vcmp.lt.f32.partialorder %v193_v44, 8388608.0 }
  0xb1   :  { %v197_v45 = vand.u32 2147483647, %v196_v43 }
  0xb3   :  { %v199_v47 = vor.u32 %v198_v46, %v197_v45 }
  0xb5   :  { %v200_v48 = vsel %vm194_vm0, %v199_v47, %v117_v41 }
  0xb6   :  { %v127_v49 = vmax.f32 %v200_v48, -32768.0 }
  0xb8   :  { %v128_v50 = vmin.f32 %v127_v49, 32767.0 }
  0xba   :  { %v129_v52 = vmul.f32 0.00024414063, %v128_v50 }
  0xbc   :  { %v134_v53 = vadd.f32 %v206_v51, %v129_v52 }
  0xbe   :  { %135 = vst [vmem:[#allocation8] sm:$0xff] %v134_v53 }
  0xbf   :  { %146 = dma.vmem_to_hbm [thread:$0]  %s142_s25, 128, %s144_s28, [#allocation5]  }
  0xc0   :  { %283 = dma.done.wait [#allocation5], 128  }
  0xc1   :  { %284 = vsyncadd [#allocation5], 4294967168 }
  0xc2   :  { %151 = vsyncpa [#allocation4], 1 }
  0xc3   :  { %152 = vsyncpa [#allocation7], 1 }
  0xc4   :  { %153 = vsyncpa [#allocation5], 1 }

</bundles_post_ra>
